<compile_context>
chip_gen: v7x
topology: tpu7x:2x2x1
jax: 0.10.0
libtpu: 0.0.40
codegen_flags: <defaults>
</compile_context>

<pallas_src>
import functools

import jax
import jax.numpy as jnp
from jax.experimental import pallas as pl
from jax.experimental.pallas import tpu as pltpu

LANE = 128      # vreg lane width (last dim)
SUBLANE = 8     # f32 sublane width (second-to-last dim)
NEG_MASK = -1e30  # baked into padded head-bias lanes -> exp() == 0 in softmax


def _round_up(x, m):
    return ((x + m - 1) // m) * m


def make_dnn_kernel(n_dbn_layers):
    """Fused kernel: sigmoid MLP stack + linear head + softmax.

    Padded class lanes carry a bias of NEG_MASK (weights are zero there), so
    their logits are ~-1e30 and contribute exp()==0 to the softmax denominator
    without any explicit per-tile masking.
    """

    def kernel(*refs):
        # refs = (x_ref, w0, b0, ..., w_{L-1}, b_{L-1}, wc, bc, out_ref)
        x_ref = refs[0]
        out_ref = refs[-1]
        p = refs[1:-1]

        h = x_ref[...]  # bf16 input tile, fed straight to the MXU

        # --- DBN: stacked sigmoid layers (bf16 MXU operands, f32 accumulate) ---
        for i in range(n_dbn_layers):
            w = p[2 * i][...]          # bf16, lane-padded
            b = p[2 * i + 1][...]      # f32,  lane-padded (zeros in padding)
            z = jnp.dot(h, w, preferred_element_type=jnp.float32) + b
            # sigmoid in f32 (safe on v5e), stored bf16 between layers
            h = jax.nn.sigmoid(z).astype(jnp.bfloat16)

        # --- classification head (padded lanes masked via the bias) ---
        wc = p[-2][...]
        bc = p[-1][...]
        logits = jnp.dot(h, wc, preferred_element_type=jnp.float32) + bc

        # --- numerically stable softmax over classes (exact normalization) ---
        m = jnp.max(logits, axis=1, keepdims=True)
        e = jnp.exp(logits - m)
        denom = jnp.sum(e, axis=1, keepdims=True)
        out_ref[...] = e / denom

    return kernel


def init_dnn_params(key, layer_sizes, n_classes):
    """Deterministic parameter init (shapes match nn.Linear layers)."""
    params = []
    dims = list(layer_sizes) + [n_classes]
    for i in range(len(dims) - 1):
        fan_in, fan_out = dims[i], dims[i + 1]
        key, kw, kb = jax.random.split(key, 3)
        bound = 1.0 / jnp.sqrt(fan_in)
        w = jax.random.uniform(kw, (fan_in, fan_out), jnp.float32, -bound, bound)
        b = jax.random.uniform(kb, (1, fan_out), jnp.float32, -bound, bound)
        params.append((w, b))
    return params


def prepare_padded_params(params):
    """Zero-pad to lane multiples; weights -> bf16 (MXU), biases stay f32.

    The final (classification) bias gets NEG_MASK in its padded lanes so the
    softmax mask is free at kernel time.
    """
    flat = []
    n = len(params)
    for idx, (w, b) in enumerate(params):
        fin, fout = w.shape
        finp, foutp = _round_up(fin, LANE), _round_up(fout, LANE)
        wp = jnp.zeros((finp, foutp), jnp.bfloat16).at[:fin, :fout].set(
            w.astype(jnp.bfloat16))
        pad_val = NEG_MASK if idx == n - 1 else 0.0
        bp = jnp.full((1, foutp), pad_val, jnp.float32).at[:, :fout].set(
            b.astype(jnp.float32))
        flat.append(wp)
        flat.append(bp)
    return tuple(flat)


@functools.partial(jax.jit, static_argnames=("n_classes", "tile_b"))
def dnn_forward(x, flat_padded_params, *, n_classes, tile_b=256):
    b, d0 = x.shape
    d0p = flat_padded_params[0].shape[0]
    cp = flat_padded_params[-1].shape[1]
    n_dbn_layers = len(flat_padded_params) // 2 - 1

    # batch tile: sanitize to a multiple of 8 sublanes, capped by padded batch
    tb = min(_round_up(max(tile_b, SUBLANE), SUBLANE), _round_up(b, SUBLANE))
    bp = _round_up(b, tb)

    # zero-pad input to (bp, d0p) and feed it in bf16 (MXU operand dtype)
    xp = jnp.zeros((bp, d0p), jnp.bfloat16).at[:b, :d0].set(
        x.astype(jnp.bfloat16))

    kernel = make_dnn_kernel(n_dbn_layers)
    grid = (bp // tb,)

    # x / out tiled over batch; weights & biases resident (same block every step)
    in_specs = [pl.BlockSpec((tb, d0p), lambda i: (i, 0))]
    for par in flat_padded_params:
        in_specs.append(pl.BlockSpec(par.shape, lambda i: (0, 0)))
    out_spec = pl.BlockSpec((tb, cp), lambda i: (i, 0))

    # VMEM budget: resident params (x2 for possible double-buffering),
    # double-buffered x/out tiles, a few live f32 activation tiles, slack.
    param_bytes = sum(p.size * p.dtype.itemsize for p in flat_padded_params)
    max_width = max(p.shape[1] for p in flat_padded_params)
    io_bytes = 2 * (tb * d0p * 2 + tb * cp * 4)
    act_bytes = 4 * tb * max_width * 4
    vmem_limit = 2 * param_bytes + io_bytes + act_bytes + (8 << 20)
    vmem_limit = int(min(max(vmem_limit, 16 << 20), 48 << 20))

    # advisory cost estimate for XLA scheduling around the custom call
    w_shapes = [flat_padded_params[2 * i].shape for i in range(n_dbn_layers + 1)]
    flops = 2 * bp * sum(fi * fo for fi, fo in w_shapes)
    transcendentals = bp * (sum(fo for _, fo in w_shapes[:-1]) + cp)
    bytes_accessed = (xp.size * 2
                      + sum(p.size * p.dtype.itemsize for p in flat_padded_params)
                      + bp * cp * 4)

    out_padded = pl.pallas_call(
        kernel,
        out_shape=jax.ShapeDtypeStruct((bp, cp), jnp.float32),
        grid=grid,
        in_specs=in_specs,
        out_specs=out_spec,
        compiler_params=pltpu.CompilerParams(
            dimension_semantics=("parallel",),
            vmem_limit_bytes=vmem_limit,
        ),
        cost_estimate=pl.CostEstimate(
            flops=flops,
            transcendentals=transcendentals,
            bytes_accessed=bytes_accessed,
        ),
    )(xp, *flat_padded_params)

    # strip batch / class padding (lane-dense slab inside the kernel, slice outside)
    return out_padded[:b, :n_classes]


def reference_forward(x, params):
    h = x
    for w, b in params[:-1]:
        h = jax.nn.sigmoid(h @ w + b)
    wc, bc = params[-1]
    logits = h @ wc + bc
    return jax.nn.softmax(logits, axis=1)


if __name__ == "__main__":
    layer_sizes = [32, 64, 32]
    n_classes = 16
    batch = 64

    key = jax.random.PRNGKey(0)
    key, kx = jax.random.split(key)
    x = jax.random.normal(kx, (batch, layer_sizes[0]), dtype=jnp.float32)

    params = init_dnn_params(key, layer_sizes, n_classes)
    flat_padded = prepare_padded_params(params)

    out = dnn_forward(x, flat_padded, n_classes=n_classes)
    out = jax.block_until_ready(out)

    ref = reference_forward(x, params)
    assert out.shape == (batch, n_classes)
    # bf16 MXU operands (f32 accumulate) vs. f32 reference: loose-but-safe tolerance
    assert jnp.allclose(out, ref, atol=1e-2, rtol=1e-2), "mismatch vs reference"
    assert jnp.allclose(jnp.sum(out, axis=1), 1.0, atol=1e-3), "softmax rows must sum to 1"

    print("KERNEL_OK")
</pallas_src>

<mosaic_0001>
module attributes {stable_mosaic.version = 11 : i64} {
  func.func @kernel(%arg0: i32, %arg1: memref<64x128xbf16, #tpu.memory_space<vmem>>, %arg2: memref<128x128xbf16, #tpu.memory_space<vmem>>, %arg3: memref<1x128xf32, #tpu.memory_space<vmem>>, %arg4: memref<128x128xbf16, #tpu.memory_space<vmem>>, %arg5: memref<1x128xf32, #tpu.memory_space<vmem>>, %arg6: memref<128x128xbf16, #tpu.memory_space<vmem>>, %arg7: memref<1x128xf32, #tpu.memory_space<vmem>>, %arg8: memref<64x128xf32, #tpu.memory_space<vmem>>) attributes {dimension_semantics = [#tpu.dimension_semantics<parallel>], iteration_bounds = array<i64: 1>, scalar_prefetch = 0 : i64, scratch_operands = 0 : i64, tpu.core_type = #tpu.core_type<tc>, window_params = [{transform_indices = @transform_0, window_bounds = array<i64: 64, 128>}, {pipeline_mode = #tpu.pipeline_mode<synchronous>, transform_indices = @transform_1, window_bounds = array<i64: 128, 128>}, {pipeline_mode = #tpu.pipeline_mode<synchronous>, transform_indices = @transform_2, window_bounds = array<i64: 1, 128>}, {pipeline_mode = #tpu.pipeline_mode<synchronous>, transform_indices = @transform_3, window_bounds = array<i64: 128, 128>}, {pipeline_mode = #tpu.pipeline_mode<synchronous>, transform_indices = @transform_4, window_bounds = array<i64: 1, 128>}, {pipeline_mode = #tpu.pipeline_mode<synchronous>, transform_indices = @transform_5, window_bounds = array<i64: 128, 128>}, {pipeline_mode = #tpu.pipeline_mode<synchronous>, transform_indices = @transform_6, window_bounds = array<i64: 1, 128>}, {transform_indices = @transform_7, window_bounds = array<i64: 64, 128>}]} {
    %c0 = arith.constant 0 : index
    %c0_0 = arith.constant 0 : index
    %0 = vector.load %arg1[%c0, %c0_0] : memref<64x128xbf16, #tpu.memory_space<vmem>>, vector<64x128xbf16>
    %c0_1 = arith.constant 0 : index
    %c0_2 = arith.constant 0 : index
    %1 = vector.load %arg2[%c0_1, %c0_2] : memref<128x128xbf16, #tpu.memory_space<vmem>>, vector<128x128xbf16>
    %c0_3 = arith.constant 0 : index
    %c0_4 = arith.constant 0 : index
    %2 = vector.load %arg3[%c0_3, %c0_4] : memref<1x128xf32, #tpu.memory_space<vmem>>, vector<1x128xf32>
    %cst = arith.constant dense<0.000000e+00> : vector<64x128xf32>
    %3 = tpu.matmul %0, %1, %cst {dimension_numbers = #tpu.dot_dimension_numbers<[1], [0], [0], [1], [0, 0, 1, 1], [], []>} : vector<64x128xbf16>, vector<128x128xbf16>, vector<64x128xf32> -> vector<64x128xf32>
    %4 = vector.broadcast %2 : vector<1x128xf32> to vector<64x128xf32>
    %5 = arith.addf %3, %4 : vector<64x128xf32>
    %6 = arith.negf %5 : vector<64x128xf32>
    %7 = math.exp %6 : vector<64x128xf32>
    %cst_5 = arith.constant 1.000000e+00 : f32
    %8 = vector.broadcast %cst_5 : f32 to vector<64x128xf32>
    %9 = arith.addf %8, %7 : vector<64x128xf32>
    %10 = arith.divf %8, %9 : vector<64x128xf32>
    %11 = arith.truncf %10 : vector<64x128xf32> to vector<64x128xbf16>
    %c0_6 = arith.constant 0 : index
    %c0_7 = arith.constant 0 : index
    %12 = vector.load %arg4[%c0_6, %c0_7] : memref<128x128xbf16, #tpu.memory_space<vmem>>, vector<128x128xbf16>
    %c0_8 = arith.constant 0 : index
    %c0_9 = arith.constant 0 : index
    %13 = vector.load %arg5[%c0_8, %c0_9] : memref<1x128xf32, #tpu.memory_space<vmem>>, vector<1x128xf32>
    %cst_10 = arith.constant dense<0.000000e+00> : vector<64x128xf32>
    %14 = tpu.matmul %11, %12, %cst_10 {dimension_numbers = #tpu.dot_dimension_numbers<[1], [0], [0], [1], [0, 0, 1, 1], [], []>} : vector<64x128xbf16>, vector<128x128xbf16>, vector<64x128xf32> -> vector<64x128xf32>
    %15 = vector.broadcast %13 : vector<1x128xf32> to vector<64x128xf32>
    %16 = arith.addf %14, %15 : vector<64x128xf32>
    %17 = arith.negf %16 : vector<64x128xf32>
    %18 = math.exp %17 : vector<64x128xf32>
    %cst_11 = arith.constant 1.000000e+00 : f32
    %19 = vector.broadcast %cst_11 : f32 to vector<64x128xf32>
    %20 = arith.addf %19, %18 : vector<64x128xf32>
    %21 = arith.divf %19, %20 : vector<64x128xf32>
    %22 = arith.truncf %21 : vector<64x128xf32> to vector<64x128xbf16>
    %c0_12 = arith.constant 0 : index
    %c0_13 = arith.constant 0 : index
    %23 = vector.load %arg6[%c0_12, %c0_13] : memref<128x128xbf16, #tpu.memory_space<vmem>>, vector<128x128xbf16>
    %c0_14 = arith.constant 0 : index
    %c0_15 = arith.constant 0 : index
    %24 = vector.load %arg7[%c0_14, %c0_15] : memref<1x128xf32, #tpu.memory_space<vmem>>, vector<1x128xf32>
    %cst_16 = arith.constant dense<0.000000e+00> : vector<64x128xf32>
    %25 = tpu.matmul %22, %23, %cst_16 {dimension_numbers = #tpu.dot_dimension_numbers<[1], [0], [0], [1], [0, 0, 1, 1], [], []>} : vector<64x128xbf16>, vector<128x128xbf16>, vector<64x128xf32> -> vector<64x128xf32>
    %26 = vector.broadcast %24 : vector<1x128xf32> to vector<64x128xf32>
    %27 = arith.addf %25, %26 : vector<64x128xf32>
    %cst_17 = arith.constant dense<0xFF800000> : vector<64xf32>
    %28 = vector.multi_reduction <maximumf>, %27, %cst_17 [1] : vector<64x128xf32> to vector<64xf32>
    %29 = vector.shape_cast %28 : vector<64xf32> to vector<64x1xf32>
    %30 = vector.broadcast %29 : vector<64x1xf32> to vector<64x128xf32>
    %31 = arith.subf %27, %30 : vector<64x128xf32>
    %32 = math.exp %31 : vector<64x128xf32>
    %cst_18 = arith.constant dense<0.000000e+00> : vector<64xf32>
    %33 = vector.multi_reduction <add>, %32, %cst_18 [1] : vector<64x128xf32> to vector<64xf32>
    %34 = vector.shape_cast %33 : vector<64xf32> to vector<64x1xf32>
    %35 = vector.broadcast %34 : vector<64x1xf32> to vector<64x128xf32>
    %36 = arith.divf %32, %35 : vector<64x128xf32>
    %c0_19 = arith.constant 0 : index
    %c0_20 = arith.constant 0 : index
    %37 = vector.load %arg8[%c0_19, %c0_20] : memref<64x128xf32, #tpu.memory_space<vmem>>, vector<64x128xf32>
    tpu.vector_store %arg8[%c0_19, %c0_20], %36 {strides = array<i32>} : memref<64x128xf32, #tpu.memory_space<vmem>>, vector<64x128xf32>,
    return
  }
  func.func @transform_0(%arg0: i32) -> (i32, i32) {
    %c0_i32 = arith.constant 0 : i32
    %c0_i32_0 = arith.constant 0 : i32
    return %arg0, %c0_i32 : i32, i32
  }
  func.func @transform_1(%arg0: i32) -> (i32, i32) {
    %c0_i32 = arith.constant 0 : i32
    %c0_i32_0 = arith.constant 0 : i32
    %c0_i32_1 = arith.constant 0 : i32
    return %c0_i32, %c0_i32_0 : i32, i32
  }
  func.func @transform_2(%arg0: i32) -> (i32, i32) {
    %c0_i32 = arith.constant 0 : i32
    %c0_i32_0 = arith.constant 0 : i32
    %c0_i32_1 = arith.constant 0 : i32
    return %c0_i32, %c0_i32_0 : i32, i32
  }
  func.func @transform_3(%arg0: i32) -> (i32, i32) {
    %c0_i32 = arith.constant 0 : i32
    %c0_i32_0 = arith.constant 0 : i32
    %c0_i32_1 = arith.constant 0 : i32
    return %c0_i32, %c0_i32_0 : i32, i32
  }
  func.func @transform_4(%arg0: i32) -> (i32, i32) {
    %c0_i32 = arith.constant 0 : i32
    %c0_i32_0 = arith.constant 0 : i32
    %c0_i32_1 = arith.constant 0 : i32
    return %c0_i32, %c0_i32_0 : i32, i32
  }
  func.func @transform_5(%arg0: i32) -> (i32, i32) {
    %c0_i32 = arith.constant 0 : i32
    %c0_i32_0 = arith.constant 0 : i32
    %c0_i32_1 = arith.constant 0 : i32
    return %c0_i32, %c0_i32_0 : i32, i32
  }
  func.func @transform_6(%arg0: i32) -> (i32, i32) {
    %c0_i32 = arith.constant 0 : i32
    %c0_i32_0 = arith.constant 0 : i32
    %c0_i32_1 = arith.constant 0 : i32
    return %c0_i32, %c0_i32_0 : i32, i32
  }
  func.func @transform_7(%arg0: i32) -> (i32, i32) {
    %c0_i32 = arith.constant 0 : i32
    %c0_i32_0 = arith.constant 0 : i32
    return %arg0, %c0_i32 : i32, i32
  }
}

</mosaic_0001>

<bundles_post_ra>
// kernel: dnn_forward.1
= control target key start
LH: loop header
LB: loop body
LE: loop exit
PB: predicated region body
PF: predicated region fallthrough
CT: control target
= control target key end

     0   :  { %s1107_s1 = inlined_call_operand.vmem [shape: bf16[128,128], index: 1, kind: input, shape index: {}]   ;;  %s1108_s0 = inlined_call_operand.vmem [shape: bf16[64,128], index: 0, kind: input, shape index: {}]   ;;  %s1109_s3 = inlined_call_operand.vmem [shape: bf16[128,128], index: 3, kind: input, shape index: {}]   ;;  %s1110_s2 = inlined_call_operand.vmem [shape: f32[1,128], index: 2, kind: input, shape index: {}]   ;;  %s1111_s5 = inlined_call_operand.vmem [shape: bf16[128,128], index: 5, kind: input, shape index: {}]   ;;  %s1112_s4 = inlined_call_operand.vmem [shape: f32[1,128], index: 4, kind: input, shape index: {}]   ;;  %s1113_s6 = inlined_call_operand.vmem [shape: f32[1,128], index: 6, kind: input, shape index: {}]   ;;  %s1114_s7 = inlined_call_operand.vmem [shape: f32[64,128], index: 7, kind: output, shape index: {}]  }
   0x1   :  { %v826_v0 = vld [vmem:[%s1107_s1] sm:$0xff]   ;;  %v827_v1 = vld [vmem:[%s1107_s1 + $0x8] sm:$0xff]   ;;  %v828_v2 = vld [vmem:[%s1107_s1 + $0x10] sm:$0xff]  }
   0x2   :  { %738 = vmatprep.subr.bf16.mxu0 %v826_v0  ;;  %v829_v3 = vld [vmem:[%s1107_s1 + $0x18] sm:$0xff]   ;;  %v834_v4 = vld [vmem:[%s1108_s0] sm:$0xff]   ;;  %v831_v6 = vld [vmem:[%s1107_s1 + $0x28] sm:$0xff]  }
   0x3   :  { %739 = vmatpush3.bf16.msra.mxu0 %v826_v0  ;;  %754 = vmatprep.mubr.bf16.mxu0 %v834_v4  ;;  %v830_v5 = vld [vmem:[%s1107_s1 + $0x20] sm:$0xff]   ;;  %v832_v7 = vld [vmem:[%s1107_s1 + $0x30] sm:$0xff]   ;;  %v833_v8 = vld [vmem:[%s1107_s1 + $0x38] sm:$0xff]  }
   0x4   :  { %740 = vmatprep.subr.bf16.mxu0 %v827_v1  ;;  %v835_v9 = vld [vmem:[%s1108_s0 + $0x8] sm:$0xff]   ;;  %v836_v10 = vld [vmem:[%s1108_s0 + $0x10] sm:$0xff]   ;;  %v837_v11 = vld [vmem:[%s1108_s0 + $0x18] sm:$0xff]  }
   0x5   :  { %v838_v12 = vld [vmem:[%s1109_s3] sm:$0xff]   ;;  %v839_v13 = vld [vmem:[%s1109_s3 + $0x8] sm:$0xff]   ;;  %v840_v14 = vld [vmem:[%s1109_s3 + $0x10] sm:$0xff]  }
   0x6   :  { %762 = vmatprep.subr.bf16.mxu1 %v838_v12  ;;  %v841_v15 = vld [vmem:[%s1109_s3 + $0x18] sm:$0xff]   ;;  %v842_v16 = vld [vmem:[%s1109_s3 + $0x20] sm:$0xff]   ;;  %v843_v17 = vld [vmem:[%s1109_s3 + $0x28] sm:$0xff]  }
   0x7   :  { %741 = vmatpush3.bf16.msra.mxu0 %v827_v1  ;;  %763 = vmatpush3.bf16.msra.mxu1 %v838_v12  ;;  %v844_v18 = vld [vmem:[%s1109_s3 + $0x30] sm:$0xff]   ;;  %v845_v19 = vld [vmem:[%s1109_s3 + $0x38] sm:$0xff]   ;;  %v655_v20 = vld [vmem:[%s1110_s2] ss:$0 sm:$0xff] }
   0x8   :  { %742 = vmatprep.subr.bf16.mxu0 %v828_v2  ;;  %764 = vmatprep.subr.bf16.mxu1 %v839_v13  ;;  %v849_v12 = vld [vmem:[%s1111_s5 + $0x18] sm:$0xff]  }
   0xb   :  { %743 = vmatpush3.bf16.msra.mxu0 %v828_v2  ;;  %765 = vmatpush3.bf16.msra.mxu1 %v839_v13  ;;  %v850_v13 = vld [vmem:[%s1111_s5 + $0x20] sm:$0xff]  }
   0xc   :  { %744 = vmatprep.subr.bf16.mxu0 %v829_v3  ;;  %766 = vmatprep.subr.bf16.mxu1 %v840_v14 }
   0xf   :  { %745 = vmatpush3.bf16.msra.mxu0 %v829_v3  ;;  %767 = vmatpush3.bf16.msra.mxu1 %v840_v14  ;;  %v851_v14 = vld [vmem:[%s1111_s5 + $0x28] sm:$0xff]  }
  0x10   :  { %746 = vmatprep.subr.bf16.mxu0 %v830_v5  ;;  %768 = vmatprep.subr.bf16.mxu1 %v841_v15 }
  0x13   :  { %747 = vmatpush3.bf16.msra.mxu0 %v830_v5  ;;  %769 = vmatpush3.bf16.msra.mxu1 %v841_v15  ;;  %v852_v15 = vld [vmem:[%s1111_s5 + $0x30] sm:$0xff]  }
  0x14   :  { %748 = vmatprep.subr.bf16.mxu0 %v831_v6  ;;  %770 = vmatprep.subr.bf16.mxu1 %v842_v16 }
  0x17   :  { %749 = vmatpush3.bf16.msra.mxu0 %v831_v6  ;;  %771 = vmatpush3.bf16.msra.mxu1 %v842_v16  ;;  %v853_v16 = vld [vmem:[%s1111_s5 + $0x38] sm:$0xff]  }
  0x18   :  { %750 = vmatprep.subr.bf16.mxu0 %v832_v7  ;;  %772 = vmatprep.subr.bf16.mxu1 %v843_v17 }
  0x1b   :  { %751 = vmatpush3.bf16.msra.mxu0 %v832_v7  ;;  %773 = vmatpush3.bf16.msra.mxu1 %v843_v17  ;;  %v676_v17 = vld [vmem:[%s1112_s4] ss:$0 sm:$0xff] }
  0x1c   :  { %752 = vmatprep.subr.bf16.mxu0 %v833_v8  ;;  %774 = vmatprep.subr.bf16.mxu1 %v844_v18 }
  0x1f   :  { %753 = vmatpush3.bf16.msra.mxu0 %v833_v8  ;;  %775 = vmatpush3.bf16.msra.mxu1 %v844_v18 }
  0x20   :  { %776 = vmatprep.subr.bf16.mxu1 %v845_v19 }
  0x22   :  { %755 = vmatmul.mubr.bf16.vlgmr.msra.gmra.mrb[0].mxu0 %v835_v9  ;;  %v846_v9 = vld [vmem:[%s1111_s5] sm:$0xff]  }
  0x23   :  { %758 = vmatprep.mubr.bf16.mxu0 %v836_v10  ;;  %777 = vmatpush3.bf16.msra.mxu1 %v845_v19  ;;  %v847_v10 = vld [vmem:[%s1111_s5 + $0x8] sm:$0xff]  }
  0x24   :  { %786 = vmatprep.subr.bf16.mxu0 %v846_v9  ;;  %810 = vmatprep.subr.bf16.mxu1 %v846_v9 }
  0x25   :  { %787 = vmatpush3.bf16.msra.mxu0 %v846_v9 }
  0x26   :  { %788 = vmatprep.subr.bf16.mxu0 %v847_v10 }
  0x29   :  { %789 = vmatpush3.bf16.msra.mxu0 %v847_v10 }
  0x2a   :  { %759 = vmatmul.mubr.bf16.gmra.mrb[4].mxu0 %v837_v11  ;;  %v848_v11 = vld [vmem:[%s1111_s5 + $0x10] sm:$0xff]  }
  0x2b   :  { %790 = vmatprep.subr.bf16.mxu0 %v848_v11 }
  0x2d   :  { %791 = vmatpush3.bf16.msra.mxu0 %v848_v11 }
  0x2e   :  { %792 = vmatprep.subr.bf16.mxu0 %v849_v12 }
  0x31   :  { %793 = vmatpush3.bf16.msra.mxu0 %v849_v12 }
  0x32   :  { %794 = vmatprep.subr.bf16.mxu0 %v850_v13 }
  0x35   :  { %795 = vmatpush3.bf16.msra.mxu0 %v850_v13 }
  0x36   :  { %796 = vmatprep.subr.bf16.mxu0 %v851_v14 }
  0x39   :  { %797 = vmatpush3.bf16.msra.mxu0 %v851_v14 }
  0x3a   :  { %798 = vmatprep.subr.bf16.mxu0 %v852_v15 }
  0x3d   :  { %799 = vmatpush3.bf16.msra.mxu0 %v852_v15 }
  0x3e   :  { %800 = vmatprep.subr.bf16.mxu0 %v853_v16 }
  0x41   :  { %801 = vmatpush3.bf16.msra.mxu0 %v853_v16 }
  0xf5   :  { %v756_v21 = vpop.f32.mrb[0].mxu0 }
  0xf6   :  { %v173_v22 = vadd.f32 %v756_v21, %v655_v20  ;;  %v164_v23 = vpop.f32.mrb[1].mxu0 }
  0xf7   :  { %v165_v24 = vadd.f32 %v655_v20, %v164_v23  ;;  %v757_v25 = vpop.f32.mrb[2].mxu0 }
  0xf8   :  { %v670_v26 = vmul.f32 -1.442695, %v173_v22  ;;  %v176_v27 = vadd.f32 %v757_v25, %v655_v20  ;;  %v167_v28 = vpop.f32.mrb[3].mxu0 }
  0xf9   :  { %v668_v29 = vmul.f32 -1.442695, %v165_v24  ;;  %v168_v30 = vadd.f32 %v655_v20, %v167_v28 }
  0xfa   :  { %854 = vpow2.f32 %v670_v26  ;;  %v671_v31 = vmul.f32 -1.442695, %v176_v27 }
  0xfb   :  { %856 = vpow2.f32 %v668_v29  ;;  %v669_v32 = vmul.f32 -1.442695, %v168_v30 }
  0xfc   :  { %858 = vpow2.f32 %v671_v31 }
  0xfd   :  { %860 = vpow2.f32 %v669_v32  ;;  %v760_v33 = vpop.f32.mrb[4].mxu0 }
  0xfe   :  { %v189_v34 = vadd.f32 %v760_v33, %v655_v20  ;;  %v180_v35 = vpop.f32.mrb[5].mxu0 }
  0xff   :  { %v181_v36 = vadd.f32 %v655_v20, %v180_v35  ;;  %v761_v37 = vpop.f32.mrb[6].mxu0 }
 0x100   :  { %v674_v38 = vmul.f32 -1.442695, %v189_v34  ;;  %v192_v39 = vadd.f32 %v761_v37, %v655_v20  ;;  %v183_v40 = vpop.f32.mrb[7].mxu0 }
 0x101   :  { %v672_v41 = vmul.f32 -1.442695, %v181_v36  ;;  %v184_v42 = vadd.f32 %v655_v20, %v183_v40 }
 0x102   :  { %862 = vpow2.f32 %v674_v38  ;;  %v675_v43 = vmul.f32 -1.442695, %v192_v39 }
 0x103   :  { %864 = vpow2.f32 %v672_v41  ;;  %v673_v44 = vmul.f32 -1.442695, %v184_v42 }
 0x104   :  { %v855_v45 = vpop.eup %854  ;;  %866 = vpow2.f32 %v675_v43 }
 0x105   :  { %v857_v46 = vpop.eup %856  ;;  %v221_v47 = vadd.f32 1.0, %v855_v45  ;;  %868 = vpow2.f32 %v673_v44 }
 0x106   :  { %v859_v48 = vpop.eup %858  ;;  %v219_v49 = vadd.f32 1.0, %v857_v46 }
 0x107   :  { %v861_v50 = vpop.eup %860  ;;  %870 = vrcp.f32 %v221_v47  ;;  %v222_v51 = vadd.f32 1.0, %v859_v48 }
 0x108   :  { %872 = vrcp.f32 %v219_v49  ;;  %v220_v52 = vadd.f32 1.0, %v861_v50 }
 0x109   :  { %874 = vrcp.f32 %v222_v51 }
 0x10a   :  { %876 = vrcp.f32 %v220_v52 }
 0x10c   :  { %v863_v53 = vpop.eup %862 }
 0x10d   :  { %v865_v54 = vpop.eup %864  ;;  %v225_v55 = vadd.f32 1.0, %v863_v53 }
 0x10e   :  { %v867_v56 = vpop.eup %866  ;;  %v223_v57 = vadd.f32 1.0, %v865_v54 }
 0x10f   :  { %v869_v58 = vpop.eup %868  ;;  %878 = vrcp.f32 %v225_v55  ;;  %v226_v59 = vadd.f32 1.0, %v867_v56 }
 0x110   :  { %880 = vrcp.f32 %v223_v57  ;;  %v224_v60 = vadd.f32 1.0, %v869_v58 }
 0x111   :  { %v871_v61 = vpop.eup %870  ;;  %882 = vrcp.f32 %v226_v59 }
 0x112   :  { %v873_v62 = vpop.eup %872  ;;  %884 = vrcp.f32 %v224_v60 }
 0x113   :  { %v875_v63 = vpop.eup %874 }
 0x114   :  { %v877_v0 = vpop.eup %876  ;;  %v244_v1 = vpack.c.bf16 %v875_v63, %v871_v61 }
 0x115   :  { %v243_v2 = vpack.c.bf16 %v877_v0, %v873_v62 }
 0x117   :  { %778 = vmatprep.mubr.bf16.mxu1 %v243_v2 }
 0x118   :  { %779 = vmatmul.mubr.bf16.vlgmr.msra.gmra.mrb[0].mxu1 %v244_v1 }
 0x119   :  { %v879_v3 = vpop.eup %878  ;;  %818 = vmatpush3.bf16.msra.mxu1 %v846_v9 }
 0x11a   :  { %v881_v4 = vpop.eup %880  ;;  %811 = vmatprep.subr.bf16.mxu1 %v847_v10 }
 0x11b   :  { %v883_v5 = vpop.eup %882 }
 0x11c   :  { %v885_v6 = vpop.eup %884  ;;  %v246_v7 = vpack.c.bf16 %v883_v5, %v879_v3 }
 0x11d   :  { %v245_v8 = vpack.c.bf16 %v885_v6, %v881_v4  ;;  %819 = vmatpush3.bf16.msra.mxu1 %v847_v10  ;;  %v693_v6 = vld [vmem:[%s1113_s6] ss:$0 sm:$0xff] }
 0x11e   :  { %812 = vmatprep.subr.bf16.mxu1 %v848_v11 }
 0x11f   :  { %782 = vmatprep.mubr.bf16.mxu1 %v245_v8 }
 0x120   :  { %783 = vmatmul.mubr.bf16.gmra.mrb[4].mxu1 %v246_v7 }
 0x121   :  { %820 = vmatpush3.bf16.msra.mxu1 %v848_v11 }
 0x122   :  { %813 = vmatprep.subr.bf16.mxu1 %v849_v12 }
 0x125   :  { %821 = vmatpush3.bf16.msra.mxu1 %v849_v12 }
 0x126   :  { %814 = vmatprep.subr.bf16.mxu1 %v850_v13 }
 0x129   :  { %822 = vmatpush3.bf16.msra.mxu1 %v850_v13 }
 0x12a   :  { %815 = vmatprep.subr.bf16.mxu1 %v851_v14 }
 0x12d   :  { %823 = vmatpush3.bf16.msra.mxu1 %v851_v14 }
 0x12e   :  { %816 = vmatprep.subr.bf16.mxu1 %v852_v15 }
 0x131   :  { %824 = vmatpush3.bf16.msra.mxu1 %v852_v15 }
 0x132   :  { %817 = vmatprep.subr.bf16.mxu1 %v853_v16 }
 0x135   :  { %825 = vmatpush3.bf16.msra.mxu1 %v853_v16 }
 0x1eb   :  { %v780_v18 = vpop.f32.mrb[0].mxu1 }
 0x1ec   :  { %v361_v19 = vadd.f32 %v780_v18, %v676_v17  ;;  %v352_v20 = vpop.f32.mrb[1].mxu1 }
 0x1ed   :  { %v353_v21 = vadd.f32 %v676_v17, %v352_v20  ;;  %v781_v22 = vpop.f32.mrb[2].mxu1 }
 0x1ee   :  { %v687_v23 = vmul.f32 -1.442695, %v361_v19  ;;  %v364_v24 = vadd.f32 %v781_v22, %v676_v17  ;;  %v355_v25 = vpop.f32.mrb[3].mxu1 }
 0x1ef   :  { %v685_v26 = vmul.f32 -1.442695, %v353_v21  ;;  %v356_v27 = vadd.f32 %v676_v17, %v355_v25 }
 0x1f0   :  { %886 = vpow2.f32 %v687_v23  ;;  %v688_v28 = vmul.f32 -1.442695, %v364_v24 }
 0x1f1   :  { %888 = vpow2.f32 %v685_v26  ;;  %v686_v29 = vmul.f32 -1.442695, %v356_v27 }
 0x1f2   :  { %890 = vpow2.f32 %v688_v28 }
 0x1f3   :  { %892 = vpow2.f32 %v686_v29  ;;  %v784_v30 = vpop.f32.mrb[4].mxu1 }
 0x1f4   :  { %v377_v31 = vadd.f32 %v784_v30, %v676_v17  ;;  %v368_v32 = vpop.f32.mrb[5].mxu1 }
 0x1f5   :  { %v369_v33 = vadd.f32 %v676_v17, %v368_v32  ;;  %v785_v34 = vpop.f32.mrb[6].mxu1 }
 0x1f6   :  { %v691_v35 = vmul.f32 -1.442695, %v377_v31  ;;  %v380_v36 = vadd.f32 %v785_v34, %v676_v17  ;;  %v371_v37 = vpop.f32.mrb[7].mxu1 }
 0x1f7   :  { %v689_v38 = vmul.f32 -1.442695, %v369_v33  ;;  %v372_v39 = vadd.f32 %v676_v17, %v371_v37 }
 0x1f8   :  { %894 = vpow2.f32 %v691_v35  ;;  %v692_v40 = vmul.f32 -1.442695, %v380_v36 }
 0x1f9   :  { %896 = vpow2.f32 %v689_v38  ;;  %v690_v41 = vmul.f32 -1.442695, %v372_v39 }
 0x1fa   :  { %v887_v42 = vpop.eup %886  ;;  %898 = vpow2.f32 %v692_v40 }
 0x1fb   :  { %v889_v43 = vpop.eup %888  ;;  %v409_v44 = vadd.f32 1.0, %v887_v42  ;;  %900 = vpow2.f32 %v690_v41 }
 0x1fc   :  { %v891_v45 = vpop.eup %890  ;;  %v407_v46 = vadd.f32 1.0, %v889_v43 }
 0x1fd   :  { %v893_v47 = vpop.eup %892  ;;  %902 = vrcp.f32 %v409_v44  ;;  %v410_v48 = vadd.f32 1.0, %v891_v45 }
 0x1fe   :  { %904 = vrcp.f32 %v407_v46  ;;  %v408_v49 = vadd.f32 1.0, %v893_v47 }
 0x1ff   :  { %906 = vrcp.f32 %v410_v48 }
 0x200   :  { %908 = vrcp.f32 %v408_v49 }
 0x202   :  { %v895_v50 = vpop.eup %894 }
 0x203   :  { %v897_v51 = vpop.eup %896  ;;  %v413_v52 = vadd.f32 1.0, %v895_v50 }
 0x204   :  { %v899_v53 = vpop.eup %898  ;;  %v411_v54 = vadd.f32 1.0, %v897_v51 }
 0x205   :  { %v901_v55 = vpop.eup %900  ;;  %910 = vrcp.f32 %v413_v52  ;;  %v414_v56 = vadd.f32 1.0, %v899_v53 }
 0x206   :  { %912 = vrcp.f32 %v411_v54  ;;  %v412_v57 = vadd.f32 1.0, %v901_v55 }
 0x207   :  { %v903_v58 = vpop.eup %902  ;;  %914 = vrcp.f32 %v414_v56 }
 0x208   :  { %v905_v59 = vpop.eup %904  ;;  %916 = vrcp.f32 %v412_v57 }
 0x209   :  { %v907_v60 = vpop.eup %906 }
 0x20a   :  { %v909_v61 = vpop.eup %908  ;;  %v432_v62 = vpack.c.bf16 %v907_v60, %v903_v58 }
 0x20b   :  { %v431_v63 = vpack.c.bf16 %v909_v61, %v905_v59 }
 0x20d   :  { %802 = vmatprep.mubr.bf16.mxu0 %v431_v63 }
 0x20e   :  { %803 = vmatmul.mubr.bf16.vlgmr.msra.gmra.mrb[8].mxu0 %v432_v62 }
 0x20f   :  { %v911_v0 = vpop.eup %910 }
 0x210   :  { %v913_v1 = vpop.eup %912 }
 0x211   :  { %v915_v2 = vpop.eup %914 }
 0x212   :  { %v917_v3 = vpop.eup %916  ;;  %v434_v4 = vpack.c.bf16 %v915_v2, %v911_v0 }
 0x213   :  { %v433_v5 = vpack.c.bf16 %v917_v3, %v913_v1 }
 0x215   :  { %806 = vmatprep.mubr.bf16.mxu1 %v433_v5 }
 0x216   :  { %807 = vmatmul.mubr.bf16.vlgmr.msra.gmra.mrb[8].mxu1 %v434_v4 }
 0x2e1   :  { %v804_v7 = vpop.f32.mrb[8].mxu0 }
 0x2e2   :  { %v549_v8 = vadd.f32 %v804_v7, %v693_v6  ;;  %v540_v9 = vpop.f32.mrb[9].mxu0 }
 0x2e3   :  { %v541_v10 = vadd.f32 %v693_v6, %v540_v9  ;;  %v805_v11 = vpop.f32.mrb[10].mxu0 }
 0x2e4   :  { %575 = vmax.xlane.f32.xlu1 %v549_v8  ;;  %v543_v12 = vpop.f32.mrb[11].mxu0  ;;  %v552_v13 = vadd.f32 %v805_v11, %v693_v6 }
 0x2e5   :  { %571 = vmax.xlane.f32.xlu0 %v541_v10  ;;  %v544_v14 = vadd.f32 %v693_v6, %v543_v12 }
 0x2e8   :  { %577 = vmax.xlane.f32.xlu1 %v552_v13 }
 0x2e9   :  { %v808_v15 = vpop.f32.mrb[8].mxu1  ;;  %573 = vmax.xlane.f32.xlu0 %v544_v14 }
 0x2ea   :  { %v556_v16 = vpop.f32.mrb[9].mxu1  ;;  %v565_v21 = vadd.f32 %v808_v15, %v693_v6 }
 0x2eb   :  { %v557_v17 = vadd.f32 %v693_v6, %v556_v16  ;;  %v809_v18 = vpop.f32.mrb[10].mxu1 }
 0x2ec   :  { %v559_v19 = vpop.f32.mrb[11].mxu1  ;;  %v568_v22 = vadd.f32 %v809_v18, %v693_v6 }
 0x2ed   :  { %v560_v20 = vadd.f32 %v693_v6, %v559_v19  ;;  %579 = vmax.xlane.f32.xlu0 %v557_v17 }
 0x2ef   :  { %581 = vmax.xlane.f32.xlu1 %v560_v20 }
 0x2f1   :  { %583 = vmax.xlane.f32.xlu0 %v565_v21 }
 0x2f3   :  { %585 = vmax.xlane.f32.xlu1 %v568_v22 }
 0x371   :  { %v576_v23 = vpop.xlane.xlu1 %575 }
 0x372   :  { %v589_v24 = vsub.f32 %v549_v8, %v576_v23  ;;  %v572_v25 = vpop.xlane.xlu0 %571 }
 0x373   :  { %v587_v26 = vsub.f32 %v541_v10, %v572_v25 }
 0x374   :  { %v599_v27 = vmul.f32 1.442695, %v589_v24 }
 0x375   :  { %v595_v28 = vmul.f32 1.442695, %v587_v26  ;;  %v578_v29 = vpop.xlane.xlu1 %577 }
 0x376   :  { %918 = vpow2.f32 %v599_v27  ;;  %v590_v30 = vsub.f32 %v552_v13, %v578_v29  ;;  %v574_v31 = vpop.xlane.xlu0 %573 }
 0x377   :  { %v588_v32 = vsub.f32 %v544_v14, %v574_v31  ;;  %920 = vpow2.f32 %v595_v28 }
 0x378   :  { %v601_v33 = vmul.f32 1.442695, %v590_v30 }
 0x379   :  { %v597_v34 = vmul.f32 1.442695, %v588_v32 }
 0x37a   :  { %922 = vpow2.f32 %v601_v33  ;;  %v580_v35 = vpop.xlane.xlu0 %579 }
 0x37b   :  { %v591_v36 = vsub.f32 %v557_v17, %v580_v35  ;;  %924 = vpow2.f32 %v597_v34 }
 0x37c   :  { %v582_v37 = vpop.xlane.xlu1 %581 }
 0x37d   :  { %v603_v38 = vmul.f32 1.442695, %v591_v36  ;;  %v592_v39 = vsub.f32 %v560_v20, %v582_v37 }
 0x37e   :  { %v584_v40 = vpop.xlane.xlu0 %583 }
 0x37f   :  { %926 = vpow2.f32 %v603_v38  ;;  %v605_v41 = vmul.f32 1.442695, %v592_v39  ;;  %v593_v42 = vsub.f32 %v565_v21, %v584_v40 }
 0x380   :  { %v919_v43 = vpop.eup %918  ;;  %v586_v44 = vpop.xlane.xlu1 %585 }
 0x381   :  { %928 = vpow2.f32 %v605_v41  ;;  %v607_v45 = vmul.f32 1.442695, %v593_v42  ;;  %v594_v46 = vsub.f32 %v568_v22, %v586_v44  ;;  %615 = vadd.xlane.f32.xlu0 %v919_v43  ;;  %v921_v47 = vpop.eup %920 }
 0x383   :  { %930 = vpow2.f32 %v607_v45  ;;  %v609_v48 = vmul.f32 1.442695, %v594_v46 }
 0x384   :  { %v923_v49 = vpop.eup %922 }
 0x385   :  { %932 = vpow2.f32 %v609_v48  ;;  %617 = vadd.xlane.f32.xlu1 %v923_v49  ;;  %611 = vadd.xlane.f32.xlu0 %v921_v47  ;;  %v925_v50 = vpop.eup %924 }
 0x389   :  { %v927_v51 = vpop.eup %926  ;;  %613 = vadd.xlane.f32.xlu1 %v925_v50 }
 0x38a   :  { %619 = vadd.xlane.f32.xlu0 %v927_v51 }
 0x38b   :  { %v929_v52 = vpop.eup %928 }
 0x38d   :  { %v931_v53 = vpop.eup %930  ;;  %621 = vadd.xlane.f32.xlu1 %v929_v52 }
 0x38e   :  { %623 = vadd.xlane.f32.xlu0 %v931_v53 }
 0x38f   :  { %v933_v54 = vpop.eup %932 }
 0x391   :  { %625 = vadd.xlane.f32.xlu1 %v933_v54 }
 0x40e   :  { %v616_v55 = vpop.xlane.xlu0 %615 }
 0x40f   :  { %934 = vrcp.f32 %v616_v55 }
 0x412   :  { %v618_v56 = vpop.xlane.xlu1 %617  ;;  %v612_v57 = vpop.xlane.xlu0 %611 }
 0x413   :  { %936 = vrcp.f32 %v618_v56 }
 0x414   :  { %938 = vrcp.f32 %v612_v57 }
 0x416   :  { %v614_v58 = vpop.xlane.xlu1 %613 }
 0x417   :  { %940 = vrcp.f32 %v614_v58  ;;  %v620_v59 = vpop.xlane.xlu0 %619 }
 0x418   :  { %942 = vrcp.f32 %v620_v59 }
 0x419   :  { %v935_v60 = vpop.eup %934 }
 0x41a   :  { %v632_v61 = vmul.f32 %v935_v60, %v919_v43  ;;  %v622_v62 = vpop.xlane.xlu1 %621 }
 0x41b   :  { %944 = vrcp.f32 %v622_v62  ;;  %v624_v63 = vpop.xlane.xlu0 %623 }
 0x41c   :  { %645 = vst [vmem:[%s1114_s7 + $0x10] sm:$0xff] %v632_v61  ;;  %946 = vrcp.f32 %v624_v63 }
 0x41d   :  { %v937_v0 = vpop.eup %936 }
 0x41e   :  { %v939_v1 = vpop.eup %938  ;;  %v634_v2 = vmul.f32 %v937_v0, %v923_v49  ;;  %v626_v3 = vpop.xlane.xlu1 %625 }
 0x41f   :  { %v628_v4 = vmul.f32 %v939_v1, %v921_v47  ;;  %948 = vrcp.f32 %v626_v3 }
 0x420   :  { %646 = vst [vmem:[%s1114_s7 + $0x18] sm:$0xff] %v634_v2 }
 0x421   :  { %v941_v5 = vpop.eup %940  ;;  %643 = vst [vmem:[%s1114_s7] sm:$0xff] %v628_v4 }
 0x422   :  { %v943_v6 = vpop.eup %942  ;;  %v630_v7 = vmul.f32 %v941_v5, %v925_v50 }
 0x423   :  { %v636_v8 = vmul.f32 %v943_v6, %v927_v51 }
 0x424   :  { %644 = vst [vmem:[%s1114_s7 + $0x8] sm:$0xff] %v630_v7 }
 0x425   :  { %v945_v9 = vpop.eup %944  ;;  %647 = vst [vmem:[%s1114_s7 + $0x20] sm:$0xff] %v636_v8 }
 0x426   :  { %v947_v10 = vpop.eup %946  ;;  %v638_v11 = vmul.f32 %v945_v9, %v929_v52 }
 0x427   :  { %v640_v12 = vmul.f32 %v947_v10, %v931_v53 }
 0x428   :  { %648 = vst [vmem:[%s1114_s7 + $0x28] sm:$0xff] %v638_v11 }
 0x429   :  { %v949_v13 = vpop.eup %948  ;;  %649 = vst [vmem:[%s1114_s7 + $0x30] sm:$0xff] %v640_v12 }
 0x42a   :  { %v642_v14 = vmul.f32 %v949_v13, %v933_v54 }
 0x42c   :  { %650 = vst [vmem:[%s1114_s7 + $0x38] sm:$0xff] %v642_v14 }

</bundles_post_ra>
